<compile_context>
chip_gen: v7x
topology: tpu7x:2x2x1
jax: 0.10.0
libtpu: 0.0.40
codegen_flags: <defaults>
</compile_context>

<pallas_src>
import functools

import jax
import jax.numpy as jnp
from jax import lax
from jax.experimental import pallas as pl
from jax.experimental.pallas import tpu as pltpu


# ------------------------- Pallas kernels -------------------------

def _conv_relu_pool_kernel(p_ref, w_ref, b_ref, o_ref):
    """Fused conv(as 4 GEMMs over pool offsets) + bias + ReLU + 2x2 maxpool
    for a tile of TB images.

    p_ref : (1, TB, 4, K, M)   bf16  -- im2col patches, one matrix per pool offset
    w_ref : (Cout, K)          bf16  -- effective conv weight
    b_ref : (Cout, 1)          f32   -- effective conv bias
    o_ref : (1, TB, Cout, M)   bf16  -- pooled activation (lane dim = M)
    """
    w = w_ref[...]
    b = b_ref[...]
    tb = p_ref.shape[1]
    for bi in range(tb):                     # static unroll, TB <= 8
        acc = jnp.dot(w, p_ref[0, bi, 0], preferred_element_type=jnp.float32)
        for d in range(1, 4):
            acc = jnp.maximum(
                acc, jnp.dot(w, p_ref[0, bi, d],
                             preferred_element_type=jnp.float32))
        # maxpool(relu(conv + b)) == relu(max_d(conv_d) + b)  (relu monotone, shared bias)
        o_ref[0, bi] = jnp.maximum(acc + b, 0.0).astype(o_ref.dtype)


def _conv_relu_pool_head_kernel(p_ref, w_ref, b_ref, wh_ref, bh_ref, o_ref):
    """Layer-2 fused conv+bias+ReLU+pool, then the 7x7 head conv (a full
    contraction of the pooled (Cout, 49) activation with the head weight),
    for a tile of TB images.

    p_ref  : (1, TB, 4, K, M)   bf16
    w_ref  : (Cout, K)          bf16
    b_ref  : (Cout, 1)          f32
    wh_ref : (Out, Cout, M)     f32   -- head weight, M = 7*7
    bh_ref : (Out, 1)           f32
    o_ref  : (1, TB, Out, 1)    f32   -- logits for each image in the tile
    """
    w = w_ref[...]
    b = b_ref[...]
    wh = wh_ref[...]
    bh = bh_ref[...]
    tb = p_ref.shape[1]
    for bi in range(tb):                     # static unroll, TB <= 8
        acc = jnp.dot(w, p_ref[0, bi, 0], preferred_element_type=jnp.float32)
        for d in range(1, 4):
            acc = jnp.maximum(
                acc, jnp.dot(w, p_ref[0, bi, d],
                             preferred_element_type=jnp.float32))
        pooled = jnp.maximum(acc + b, 0.0)                 # (Cout, M) f32

        # 7x7 head conv at 1x1 output: full contraction over (channel, spatial).
        prod = wh * pooled[None, :, :]                     # (Out, Cout, M) VPU
        logits = jnp.sum(jnp.sum(prod, axis=2), axis=1, keepdims=True) + bh
        o_ref[0, bi] = logits                              # (Out, 1)


# ------------------------- pallas_call wrappers -------------------------

def fused_conv_relu_pool(P, w, b):
    """P: (NT, TB, 4, K, M) bf16, w: (Cout, K) bf16, b: (Cout, 1) f32
    -> (NT, TB, Cout, M) bf16."""
    NT, TB, _, K, M = P.shape
    Cout = w.shape[0]
    return pl.pallas_call(
        _conv_relu_pool_kernel,
        out_shape=jax.ShapeDtypeStruct((NT, TB, Cout, M), jnp.bfloat16),
        grid=(NT,),
        in_specs=[
            pl.BlockSpec((1, TB, 4, K, M), lambda i: (i, 0, 0, 0, 0)),
            pl.BlockSpec((Cout, K), lambda i: (0, 0)),
            pl.BlockSpec((Cout, 1), lambda i: (0, 0)),
        ],
        out_specs=pl.BlockSpec((1, TB, Cout, M), lambda i: (i, 0, 0, 0)),
        compiler_params=pltpu.CompilerParams(dimension_semantics=("parallel",)),
    )(P, w, b)


def fused_conv_relu_pool_head(P, w, b, wh, bh):
    """Layer 2 + head.  P: (NT, TB, 4, K, M) bf16; wh: (Out, Cout, M) f32
    -> (NT, TB, Out, 1) f32."""
    NT, TB, _, K, M = P.shape
    Cout = w.shape[0]
    Out = wh.shape[0]
    return pl.pallas_call(
        _conv_relu_pool_head_kernel,
        out_shape=jax.ShapeDtypeStruct((NT, TB, Out, 1), jnp.float32),
        grid=(NT,),
        in_specs=[
            pl.BlockSpec((1, TB, 4, K, M), lambda i: (i, 0, 0, 0, 0)),
            pl.BlockSpec((Cout, K), lambda i: (0, 0)),
            pl.BlockSpec((Cout, 1), lambda i: (0, 0)),
            pl.BlockSpec((Out, Cout, M), lambda i: (0, 0, 0)),
            pl.BlockSpec((Out, 1), lambda i: (0, 0)),
        ],
        out_specs=pl.BlockSpec((1, TB, Out, 1), lambda i: (i, 0, 0, 0)),
        compiler_params=pltpu.CompilerParams(dimension_semantics=("parallel",)),
    )(P, w, b, wh, bh)


# ------------------------- JAX glue -------------------------

def pooled_conv_patches(x_nchw, kh, kw, pad):
    """NCHW input -> (B, 4, C*kh*kw, Hp*Wp) patches, one patch matrix per 2x2
    maxpool offset, so conv+pool become 4 GEMMs + an elementwise max inside the
    kernel.  K ordering is (c, ki, kj), matching PyTorch weight.reshape(Cout, -1).
    """
    B, C, H, W = x_nchw.shape
    Ho, Wo = H + 2 * pad - kh + 1, W + 2 * pad - kw + 1   # conv output size
    Hp, Wp = Ho // 2, Wo // 2                              # pooled output size
    xp = jnp.pad(x_nchw, ((0, 0), (0, 0), (pad, pad), (pad, pad)))
    offsets = []
    for di in (0, 1):
        for dj in (0, 1):
            taps = [xp[:, :, di + ki: di + ki + 2 * Hp: 2,
                          dj + kj: dj + kj + 2 * Wp: 2]          # (B, C, Hp, Wp)
                    for ki in range(kh) for kj in range(kw)]
            t = jnp.stack(taps, axis=2)                           # (B, C, kh*kw, Hp, Wp)
            offsets.append(t.reshape(B, C * kh * kw, Hp * Wp))
    return jnp.stack(offsets, axis=1), (Hp, Wp)                   # (B, 4, K, Hp*Wp)


def _effective(mu_w, mu_b, lv_w, lv_b, kw, kb):
    """mu-conv + exponentiated-noised-conv folded into one conv's weights."""
    eps_w = jax.random.normal(kw, lv_w.shape, jnp.float32)
    eps_b = jax.random.normal(kb, lv_b.shape, jnp.float32)
    W = mu_w + jnp.exp(0.5 * lv_w) * eps_w
    b = mu_b + jnp.exp(0.5 * lv_b) * eps_b
    return W, b


def make_effective_params(params, task_id, noise_key):
    keys = jax.random.split(noise_key, 6)
    W1, b1 = _effective(params["mu1_w"], params["mu1_b"],
                        params["lv1_w"], params["lv1_b"], keys[0], keys[1])
    W2, b2 = _effective(params["mu2_w"], params["mu2_b"],
                        params["lv2_w"], params["lv2_b"], keys[2], keys[3])
    Wh, bh = _effective(params["muh_w"][task_id], params["muh_b"][task_id],
                        params["lvh_w"][task_id], params["lvh_b"][task_id],
                        keys[4], keys[5])
    return dict(W1=W1, b1=b1, W2=W2, b2=b2, Wh=Wh, bh=bh)


def _pick_batch_tile(B):
    """Images per grid step: keep >= 2 grid steps (megacore) when B >= 2, cap
    the in-kernel unroll at 8."""
    if B <= 1:
        return 1
    return min(8, (B + 1) // 2)


def _apply_pallas(x_nchw, eff):
    x = x_nchw.astype(jnp.float32)
    B = x.shape[0]
    hid = eff["W1"].shape[0]
    out_ch = eff["Wh"].shape[0]

    TB = _pick_batch_tile(B)
    NT = -(-B // TB)
    B_pad = NT * TB
    if B_pad != B:
        x = jnp.pad(x, ((0, B_pad - B), (0, 0), (0, 0), (0, 0)))

    # ----- layer 1: conv3x3(pad=1) [mu1 + log_var1] -> ReLU -> maxpool 2x2 -----
    P1, (H1, Wd1) = pooled_conv_patches(x, 3, 3, 1)          # (B_pad, 4, 9, 196) f32
    K1, M1 = P1.shape[2], P1.shape[3]
    P1 = P1.astype(jnp.bfloat16).reshape(NT, TB, 4, K1, M1)
    y1 = fused_conv_relu_pool(
        P1,
        eff["W1"].reshape(hid, -1).astype(jnp.bfloat16),
        eff["b1"].reshape(hid, 1).astype(jnp.float32))       # (NT, TB, hid, 196) bf16
    y1 = y1.reshape(B_pad, hid, H1, Wd1)                     # NCHW (B_pad, 8, 14, 14)

    # ----- layer 2 + head: conv3x3 -> ReLU -> pool -> conv7x7[task_id] -> squeeze -----
    P2, (H2, Wd2) = pooled_conv_patches(y1, 3, 3, 1)         # (B_pad, 4, 72, 49) bf16
    K2, M2 = P2.shape[2], H2 * Wd2                           # 49 == 7*7 head window
    P2 = P2.reshape(NT, TB, 4, K2, M2)
    logits = fused_conv_relu_pool_head(
        P2,
        eff["W2"].reshape(hid, -1).astype(jnp.bfloat16),
        eff["b2"].reshape(hid, 1).astype(jnp.float32),
        eff["Wh"].reshape(out_ch, hid, M2).astype(jnp.float32),
        eff["bh"].reshape(out_ch, 1).astype(jnp.float32))    # (NT, TB, out_ch, 1)
    logits = logits.reshape(B_pad, out_ch, 1, 1)[:B]
    return jnp.squeeze(logits)                               # matches torch x.squeeze()


@functools.partial(jax.jit, static_argnames=("task_id",))
def convnet_vi_forward(x_nchw, params, task_id, noise_key):
    eff = make_effective_params(params, task_id, noise_key)
    return _apply_pallas(x_nchw, eff)


# ------------------------- pure-JAX reference (for correctness check) -------------------------

def _ref_forward(x, eff):
    def conv(x, W, b, pad):
        y = lax.conv_general_dilated(
            x, W, window_strides=(1, 1), padding=[(pad, pad), (pad, pad)],
            dimension_numbers=("NCHW", "OIHW", "NCHW"))
        return y + b[None, :, None, None]

    def pool(x):
        return lax.reduce_window(x, -jnp.inf, lax.max,
                                 (1, 1, 2, 2), (1, 1, 2, 2), "VALID")

    x = x.astype(jnp.float32)
    y = pool(jax.nn.relu(conv(x, eff["W1"], eff["b1"], 1)))
    y = pool(jax.nn.relu(conv(y, eff["W2"], eff["b2"], 1)))
    y = conv(y, eff["Wh"], eff["bh"], 0)
    return jnp.squeeze(y)


# ------------------------- parameter construction -------------------------

def init_params(key, in_ch=1, hid=8, out_ch=2, nb_heads=2, sigma_0=-6.0):
    """Deterministic synthetic init matching ConvNet_VI.__init__ shapes
    (mu layers ~ normal; log_var layers == sigma_0 = -6, mu_head std 0.1)."""
    ks = jax.random.split(key, 6)
    return dict(
        mu1_w=0.3 * jax.random.normal(ks[0], (hid, in_ch, 3, 3), jnp.float32),
        mu1_b=0.1 * jax.random.normal(ks[1], (hid,), jnp.float32),
        mu2_w=0.2 * jax.random.normal(ks[2], (hid, hid, 3, 3), jnp.float32),
        mu2_b=0.1 * jax.random.normal(ks[3], (hid,), jnp.float32),
        muh_w=0.1 * jax.random.normal(ks[4], (nb_heads, out_ch, hid, 7, 7), jnp.float32),
        muh_b=0.1 * jax.random.normal(ks[5], (nb_heads, out_ch), jnp.float32),
        lv1_w=jnp.full((hid, in_ch, 3, 3), sigma_0, jnp.float32),
        lv1_b=jnp.full((hid,), sigma_0, jnp.float32),
        lv2_w=jnp.full((hid, hid, 3, 3), sigma_0, jnp.float32),
        lv2_b=jnp.full((hid,), sigma_0, jnp.float32),
        lvh_w=jnp.full((nb_heads, out_ch, hid, 7, 7), sigma_0, jnp.float32),
        lvh_b=jnp.full((nb_heads, out_ch), sigma_0, jnp.float32),
    )


if __name__ == "__main__":
    key = jax.random.PRNGKey(0)
    pkey, xkey, nkey = jax.random.split(key, 3)

    # Split-MNIST sized input: batch=2, 1 channel, 28x28 (28 is required by the
    # 7x7 head after two 2x2 pools: 28 -> 14 -> 7 -> 1).
    params = init_params(pkey, in_ch=1, hid=8, out_ch=2, nb_heads=2)
    x = jax.random.normal(xkey, (2, 1, 28, 28), jnp.float32)  # NCHW like PyTorch

    out = convnet_vi_forward(x, params, task_id=0, noise_key=nkey)
    out = jax.block_until_ready(out)
    assert out.shape == (2, 2), out.shape

    # Correctness check against a pure-JAX (f32) reference with the same
    # effective (noise-folded) weights.  bf16 MXU inputs -> loose tolerance.
    eff = make_effective_params(params, 0, nkey)
    ref = jax.block_until_ready(_ref_forward(x, eff))
    max_err = float(jnp.max(jnp.abs(out - ref)))
    assert jnp.allclose(out, ref, rtol=5e-2, atol=5e-2), f"max_err={max_err}"

    print("KERNEL_OK")
</pallas_src>

<mosaic_0001>
module attributes {stable_mosaic.version = 11 : i64} {
  func.func @_conv_relu_pool_kernel(%arg0: i32, %arg1: memref<1x1x4x9x196xbf16, #tpu.memory_space<vmem>>, %arg2: memref<8x9xbf16, #tpu.memory_space<vmem>>, %arg3: memref<8x1xf32, #tpu.memory_space<vmem>>, %arg4: memref<1x1x8x196xbf16, #tpu.memory_space<vmem>>) attributes {dimension_semantics = [#tpu.dimension_semantics<parallel>], iteration_bounds = array<i64: 2>, scalar_prefetch = 0 : i64, scratch_operands = 0 : i64, tpu.core_type = #tpu.core_type<tc>, window_params = [{transform_indices = @transform_0, window_bounds = array<i64: 1, 1, 4, 9, 196>}, {pipeline_mode = #tpu.pipeline_mode<synchronous>, transform_indices = @transform_1, window_bounds = array<i64: 8, 9>}, {pipeline_mode = #tpu.pipeline_mode<synchronous>, transform_indices = @transform_2, window_bounds = array<i64: 8, 1>}, {transform_indices = @transform_3, window_bounds = array<i64: 1, 1, 8, 196>}]} {
    %c0 = arith.constant 0 : index
    %c0_0 = arith.constant 0 : index
    %0 = vector.load %arg2[%c0, %c0_0] : memref<8x9xbf16, #tpu.memory_space<vmem>>, vector<8x9xbf16>
    %c0_1 = arith.constant 0 : index
    %c0_2 = arith.constant 0 : index
    %1 = vector.load %arg3[%c0_1, %c0_2] : memref<8x1xf32, #tpu.memory_space<vmem>>, vector<8x1xf32>
    %c0_3 = arith.constant 0 : index
    %c0_4 = arith.constant 0 : index
    %c0_5 = arith.constant 0 : index
    %c0_6 = arith.constant 0 : index
    %c0_7 = arith.constant 0 : index
    %2 = vector.load %arg1[%c0_3, %c0_4, %c0_5, %c0_6, %c0_7] : memref<1x1x4x9x196xbf16, #tpu.memory_space<vmem>>, vector<1x1x1x9x196xbf16>
    %3 = vector.shape_cast %2 : vector<1x1x1x9x196xbf16> to vector<9x196xbf16>
    %cst = arith.constant dense<0.000000e+00> : vector<8x196xf32>
    %4 = tpu.matmul %0, %3, %cst {dimension_numbers = #tpu.dot_dimension_numbers<[1], [0], [0], [1], [0, 0, 1, 1], [], []>} : vector<8x9xbf16>, vector<9x196xbf16>, vector<8x196xf32> -> vector<8x196xf32>
    %c0_8 = arith.constant 0 : index
    %c0_9 = arith.constant 0 : index
    %c1 = arith.constant 1 : index
    %c0_10 = arith.constant 0 : index
    %c0_11 = arith.constant 0 : index
    %5 = vector.load %arg1[%c0_8, %c0_9, %c1, %c0_10, %c0_11] : memref<1x1x4x9x196xbf16, #tpu.memory_space<vmem>>, vector<1x1x1x9x196xbf16>
    %6 = vector.shape_cast %5 : vector<1x1x1x9x196xbf16> to vector<9x196xbf16>
    %cst_12 = arith.constant dense<0.000000e+00> : vector<8x196xf32>
    %7 = tpu.matmul %0, %6, %cst_12 {dimension_numbers = #tpu.dot_dimension_numbers<[1], [0], [0], [1], [0, 0, 1, 1], [], []>} : vector<8x9xbf16>, vector<9x196xbf16>, vector<8x196xf32> -> vector<8x196xf32>
    %8 = arith.maximumf %4, %7 : vector<8x196xf32>
    %c0_13 = arith.constant 0 : index
    %c0_14 = arith.constant 0 : index
    %c2 = arith.constant 2 : index
    %c0_15 = arith.constant 0 : index
    %c0_16 = arith.constant 0 : index
    %9 = vector.load %arg1[%c0_13, %c0_14, %c2, %c0_15, %c0_16] : memref<1x1x4x9x196xbf16, #tpu.memory_space<vmem>>, vector<1x1x1x9x196xbf16>
    %10 = vector.shape_cast %9 : vector<1x1x1x9x196xbf16> to vector<9x196xbf16>
    %cst_17 = arith.constant dense<0.000000e+00> : vector<8x196xf32>
    %11 = tpu.matmul %0, %10, %cst_17 {dimension_numbers = #tpu.dot_dimension_numbers<[1], [0], [0], [1], [0, 0, 1, 1], [], []>} : vector<8x9xbf16>, vector<9x196xbf16>, vector<8x196xf32> -> vector<8x196xf32>
    %12 = arith.maximumf %8, %11 : vector<8x196xf32>
    %c0_18 = arith.constant 0 : index
    %c0_19 = arith.constant 0 : index
    %c3 = arith.constant 3 : index
    %c0_20 = arith.constant 0 : index
    %c0_21 = arith.constant 0 : index
    %13 = vector.load %arg1[%c0_18, %c0_19, %c3, %c0_20, %c0_21] : memref<1x1x4x9x196xbf16, #tpu.memory_space<vmem>>, vector<1x1x1x9x196xbf16>
    %14 = vector.shape_cast %13 : vector<1x1x1x9x196xbf16> to vector<9x196xbf16>
    %cst_22 = arith.constant dense<0.000000e+00> : vector<8x196xf32>
    %15 = tpu.matmul %0, %14, %cst_22 {dimension_numbers = #tpu.dot_dimension_numbers<[1], [0], [0], [1], [0, 0, 1, 1], [], []>} : vector<8x9xbf16>, vector<9x196xbf16>, vector<8x196xf32> -> vector<8x196xf32>
    %16 = arith.maximumf %12, %15 : vector<8x196xf32>
    %17 = vector.broadcast %1 : vector<8x1xf32> to vector<8x196xf32>
    %18 = arith.addf %16, %17 : vector<8x196xf32>
    %cst_23 = arith.constant 0.000000e+00 : f32
    %19 = vector.broadcast %cst_23 : f32 to vector<8x196xf32>
    %20 = arith.maximumf %18, %19 : vector<8x196xf32>
    %21 = arith.truncf %20 : vector<8x196xf32> to vector<8x196xbf16>
    %c0_24 = arith.constant 0 : index
    %c0_25 = arith.constant 0 : index
    %c0_26 = arith.constant 0 : index
    %c0_27 = arith.constant 0 : index
    %22 = vector.load %arg4[%c0_24, %c0_25, %c0_26, %c0_27] : memref<1x1x8x196xbf16, #tpu.memory_space<vmem>>, vector<1x1x8x196xbf16>
    %23 = vector.shape_cast %22 : vector<1x1x8x196xbf16> to vector<8x196xbf16>
    %24 = vector.shape_cast %21 : vector<8x196xbf16> to vector<1x1x8x196xbf16>
    tpu.vector_store %arg4[%c0_24, %c0_25, %c0_26, %c0_27], %24 {strides = array<i32>} : memref<1x1x8x196xbf16, #tpu.memory_space<vmem>>, vector<1x1x8x196xbf16>,
    return
  }
  func.func @transform_0(%arg0: i32) -> (i32, i32, i32, i32, i32) {
    %c0_i32 = arith.constant 0 : i32
    %c0_i32_0 = arith.constant 0 : i32
    %c0_i32_1 = arith.constant 0 : i32
    %c0_i32_2 = arith.constant 0 : i32
    %c0_i32_3 = arith.constant 0 : i32
    return %arg0, %c0_i32, %c0_i32_0, %c0_i32_1, %c0_i32_2 : i32, i32, i32, i32, i32
  }
  func.func @transform_1(%arg0: i32) -> (i32, i32) {
    %c0_i32 = arith.constant 0 : i32
    %c0_i32_0 = arith.constant 0 : i32
    %c0_i32_1 = arith.constant 0 : i32
    return %c0_i32, %c0_i32_0 : i32, i32
  }
  func.func @transform_2(%arg0: i32) -> (i32, i32) {
    %c0_i32 = arith.constant 0 : i32
    %c0_i32_0 = arith.constant 0 : i32
    %c0_i32_1 = arith.constant 0 : i32
    return %c0_i32, %c0_i32_0 : i32, i32
  }
  func.func @transform_3(%arg0: i32) -> (i32, i32, i32, i32) {
    %c0_i32 = arith.constant 0 : i32
    %c0_i32_0 = arith.constant 0 : i32
    %c0_i32_1 = arith.constant 0 : i32
    %c0_i32_2 = arith.constant 0 : i32
    return %arg0, %c0_i32, %c0_i32_0, %c0_i32_1 : i32, i32, i32, i32
  }
}

module attributes {stable_mosaic.version = 11 : i64} {
  func.func @_conv_relu_pool_head_kernel(%arg0: i32, %arg1: memref<1x1x4x72x49xbf16, #tpu.memory_space<vmem>>, %arg2: memref<8x72xbf16, #tpu.memory_space<vmem>>, %arg3: memref<8x1xf32, #tpu.memory_space<vmem>>, %arg4: memref<2x8x49xf32, #tpu.memory_space<vmem>>, %arg5: memref<2x1xf32, #tpu.memory_space<vmem>>, %arg6: memref<1x1x2x1xf32, #tpu.memory_space<vmem>>) attributes {dimension_semantics = [#tpu.dimension_semantics<parallel>], iteration_bounds = array<i64: 2>, scalar_prefetch = 0 : i64, scratch_operands = 0 : i64, tpu.core_type = #tpu.core_type<tc>, window_params = [{transform_indices = @transform_0, window_bounds = array<i64: 1, 1, 4, 72, 49>}, {pipeline_mode = #tpu.pipeline_mode<synchronous>, transform_indices = @transform_1, window_bounds = array<i64: 8, 72>}, {pipeline_mode = #tpu.pipeline_mode<synchronous>, transform_indices = @transform_2, window_bounds = array<i64: 8, 1>}, {pipeline_mode = #tpu.pipeline_mode<synchronous>, transform_indices = @transform_3, window_bounds = array<i64: 2, 8, 49>}, {pipeline_mode = #tpu.pipeline_mode<synchronous>, transform_indices = @transform_4, window_bounds = array<i64: 2, 1>}, {transform_indices = @transform_5, window_bounds = array<i64: 1, 1, 2, 1>}]} {
    %c0 = arith.constant 0 : index
    %c0_0 = arith.constant 0 : index
    %0 = vector.load %arg2[%c0, %c0_0] : memref<8x72xbf16, #tpu.memory_space<vmem>>, vector<8x72xbf16>
    %c0_1 = arith.constant 0 : index
    %c0_2 = arith.constant 0 : index
    %1 = vector.load %arg3[%c0_1, %c0_2] : memref<8x1xf32, #tpu.memory_space<vmem>>, vector<8x1xf32>
    %c0_3 = arith.constant 0 : index
    %c0_4 = arith.constant 0 : index
    %c0_5 = arith.constant 0 : index
    %2 = vector.load %arg4[%c0_3, %c0_4, %c0_5] : memref<2x8x49xf32, #tpu.memory_space<vmem>>, vector<2x8x49xf32>
    %c0_6 = arith.constant 0 : index
    %c0_7 = arith.constant 0 : index
    %3 = vector.load %arg5[%c0_6, %c0_7] : memref<2x1xf32, #tpu.memory_space<vmem>>, vector<2x1xf32>
    %c0_8 = arith.constant 0 : index
    %c0_9 = arith.constant 0 : index
    %c0_10 = arith.constant 0 : index
    %c0_11 = arith.constant 0 : index
    %c0_12 = arith.constant 0 : index
    %4 = vector.load %arg1[%c0_8, %c0_9, %c0_10, %c0_11, %c0_12] : memref<1x1x4x72x49xbf16, #tpu.memory_space<vmem>>, vector<1x1x1x72x49xbf16>
    %5 = vector.shape_cast %4 : vector<1x1x1x72x49xbf16> to vector<72x49xbf16>
    %cst = arith.constant dense<0.000000e+00> : vector<8x49xf32>
    %6 = tpu.matmul %0, %5, %cst {dimension_numbers = #tpu.dot_dimension_numbers<[1], [0], [0], [1], [0, 0, 1, 1], [], []>} : vector<8x72xbf16>, vector<72x49xbf16>, vector<8x49xf32> -> vector<8x49xf32>
    %c0_13 = arith.constant 0 : index
    %c0_14 = arith.constant 0 : index
    %c1 = arith.constant 1 : index
    %c0_15 = arith.constant 0 : index
    %c0_16 = arith.constant 0 : index
    %7 = vector.load %arg1[%c0_13, %c0_14, %c1, %c0_15, %c0_16] : memref<1x1x4x72x49xbf16, #tpu.memory_space<vmem>>, vector<1x1x1x72x49xbf16>
    %8 = vector.shape_cast %7 : vector<1x1x1x72x49xbf16> to vector<72x49xbf16>
    %cst_17 = arith.constant dense<0.000000e+00> : vector<8x49xf32>
    %9 = tpu.matmul %0, %8, %cst_17 {dimension_numbers = #tpu.dot_dimension_numbers<[1], [0], [0], [1], [0, 0, 1, 1], [], []>} : vector<8x72xbf16>, vector<72x49xbf16>, vector<8x49xf32> -> vector<8x49xf32>
    %10 = arith.maximumf %6, %9 : vector<8x49xf32>
    %c0_18 = arith.constant 0 : index
    %c0_19 = arith.constant 0 : index
    %c2 = arith.constant 2 : index
    %c0_20 = arith.constant 0 : index
    %c0_21 = arith.constant 0 : index
    %11 = vector.load %arg1[%c0_18, %c0_19, %c2, %c0_20, %c0_21] : memref<1x1x4x72x49xbf16, #tpu.memory_space<vmem>>, vector<1x1x1x72x49xbf16>
    %12 = vector.shape_cast %11 : vector<1x1x1x72x49xbf16> to vector<72x49xbf16>
    %cst_22 = arith.constant dense<0.000000e+00> : vector<8x49xf32>
    %13 = tpu.matmul %0, %12, %cst_22 {dimension_numbers = #tpu.dot_dimension_numbers<[1], [0], [0], [1], [0, 0, 1, 1], [], []>} : vector<8x72xbf16>, vector<72x49xbf16>, vector<8x49xf32> -> vector<8x49xf32>
    %14 = arith.maximumf %10, %13 : vector<8x49xf32>
    %c0_23 = arith.constant 0 : index
    %c0_24 = arith.constant 0 : index
    %c3 = arith.constant 3 : index
    %c0_25 = arith.constant 0 : index
    %c0_26 = arith.constant 0 : index
    %15 = vector.load %arg1[%c0_23, %c0_24, %c3, %c0_25, %c0_26] : memref<1x1x4x72x49xbf16, #tpu.memory_space<vmem>>, vector<1x1x1x72x49xbf16>
    %16 = vector.shape_cast %15 : vector<1x1x1x72x49xbf16> to vector<72x49xbf16>
    %cst_27 = arith.constant dense<0.000000e+00> : vector<8x49xf32>
    %17 = tpu.matmul %0, %16, %cst_27 {dimension_numbers = #tpu.dot_dimension_numbers<[1], [0], [0], [1], [0, 0, 1, 1], [], []>} : vector<8x72xbf16>, vector<72x49xbf16>, vector<8x49xf32> -> vector<8x49xf32>
    %18 = arith.maximumf %14, %17 : vector<8x49xf32>
    %19 = vector.broadcast %1 : vector<8x1xf32> to vector<8x49xf32>
    %20 = arith.addf %18, %19 : vector<8x49xf32>
    %cst_28 = arith.constant 0.000000e+00 : f32
    %21 = vector.broadcast %cst_28 : f32 to vector<8x49xf32>
    %22 = arith.maximumf %20, %21 : vector<8x49xf32>
    %23 = vector.shape_cast %22 : vector<8x49xf32> to vector<1x8x49xf32>
    %24 = vector.broadcast %23 : vector<1x8x49xf32> to vector<2x8x49xf32>
    %25 = arith.mulf %2, %24 : vector<2x8x49xf32>
    %cst_29 = arith.constant dense<0.000000e+00> : vector<2x8xf32>
    %26 = vector.multi_reduction <add>, %25, %cst_29 [2] : vector<2x8x49xf32> to vector<2x8xf32>
    %cst_30 = arith.constant dense<0.000000e+00> : vector<2xf32>
    %27 = vector.multi_reduction <add>, %26, %cst_30 [1] : vector<2x8xf32> to vector<2xf32>
    %28 = vector.shape_cast %27 : vector<2xf32> to vector<2x1xf32>
    %29 = arith.addf %28, %3 : vector<2x1xf32>
    %c0_31 = arith.constant 0 : index
    %c0_32 = arith.constant 0 : index
    %c0_33 = arith.constant 0 : index
    %c0_34 = arith.constant 0 : index
    %30 = vector.load %arg6[%c0_31, %c0_32, %c0_33, %c0_34] : memref<1x1x2x1xf32, #tpu.memory_space<vmem>>, vector<1x1x2x1xf32>
    %31 = vector.shape_cast %30 : vector<1x1x2x1xf32> to vector<2x1xf32>
    %32 = vector.shape_cast %29 : vector<2x1xf32> to vector<1x1x2x1xf32>
    tpu.vector_store %arg6[%c0_31, %c0_32, %c0_33, %c0_34], %32 {strides = array<i32>} : memref<1x1x2x1xf32, #tpu.memory_space<vmem>>, vector<1x1x2x1xf32>,
    return
  }
  func.func @transform_0(%arg0: i32) -> (i32, i32, i32, i32, i32) {
    %c0_i32 = arith.constant 0 : i32
    %c0_i32_0 = arith.constant 0 : i32
    %c0_i32_1 = arith.constant 0 : i32
    %c0_i32_2 = arith.constant 0 : i32
    %c0_i32_3 = arith.constant 0 : i32
    return %arg0, %c0_i32, %c0_i32_0, %c0_i32_1, %c0_i32_2 : i32, i32, i32, i32, i32
  }
  func.func @transform_1(%arg0: i32) -> (i32, i32) {
    %c0_i32 = arith.constant 0 : i32
    %c0_i32_0 = arith.constant 0 : i32
    %c0_i32_1 = arith.constant 0 : i32
    return %c0_i32, %c0_i32_0 : i32, i32
  }
  func.func @transform_2(%arg0: i32) -> (i32, i32) {
    %c0_i32 = arith.constant 0 : i32
    %c0_i32_0 = arith.constant 0 : i32
    %c0_i32_1 = arith.constant 0 : i32
    return %c0_i32, %c0_i32_0 : i32, i32
  }
  func.func @transform_3(%arg0: i32) -> (i32, i32, i32) {
    %c0_i32 = arith.constant 0 : i32
    %c0_i32_0 = arith.constant 0 : i32
    %c0_i32_1 = arith.constant 0 : i32
    %c0_i32_2 = arith.constant 0 : i32
    return %c0_i32, %c0_i32_0, %c0_i32_1 : i32, i32, i32
  }
  func.func @transform_4(%arg0: i32) -> (i32, i32) {
    %c0_i32 = arith.constant 0 : i32
    %c0_i32_0 = arith.constant 0 : i32
    %c0_i32_1 = arith.constant 0 : i32
    return %c0_i32, %c0_i32_0 : i32, i32
  }
  func.func @transform_5(%arg0: i32) -> (i32, i32, i32, i32) {
    %c0_i32 = arith.constant 0 : i32
    %c0_i32_0 = arith.constant 0 : i32
    %c0_i32_1 = arith.constant 0 : i32
    %c0_i32_2 = arith.constant 0 : i32
    return %arg0, %c0_i32, %c0_i32_0, %c0_i32_1 : i32, i32, i32, i32
  }
}

</mosaic_0001>

<bundles_post_ra>
// kernel: convnet_vi_forward.2
= control target key start
LH: loop header
LB: loop body
LE: loop exit
PB: predicated region body
PF: predicated region fallthrough
CT: control target
= control target key end

     0   :  { %s580_s12 = smov 0   ;;  %s609_s0 = inlined_call_operand.vmem [shape: bf16[2,1,4,9,196], index: 0, kind: input, shape index: {}]   ;;  %s610_s1 = inlined_call_operand.vmem [shape: bf16[8,9], index: 1, kind: input, shape index: {}]   ;;  %s611_s2 = inlined_call_operand.vmem [shape: f32[8,1], index: 2, kind: input, shape index: {}]   ;;  %s612_s3 = inlined_call_operand.vmem [shape: bf16[2,1,8,196], index: 3, kind: output, shape index: {}]  }
   0x1 LB: > { %s494_s13 = sadd.s32 4294967295, %s556_s12   ;;  %p498_p0 = scmp.ge.s32.totalorder %s556_s12, 1  ;;  %s556_s12 = sphi %s580_s12, %s13_s12  }
   0x2   : > { %p137_p1 = scmp.lt.s32.totalorder %s556_s12, 3 }
   0x4   : > { %p138_p2 = pnand %p498_p0, %p137_p1 }
   0x5   : > { %p161_p3 = scmp.lt.s32.totalorder (!%p138_p2), %s494_s13, 1  ;;  %vm188_vm0 = vcmask (!%p138_p2), 1043456   ;;  %v173_v0 = vld [vmem:[%s611_s2] sm:$0xff] (!%p138_p2)  ;;  %v558_v1 = vmov (!%p138_p2), 0   ;;  %vm189_vm1 = vcmask (!%p138_p2), 1044480   ;;  %v559_v2 = vmov (!%p138_p2), 65535  }
   0x6   : > { %141 = sbr.rel (%p138_p2) target bundleno = 255 (0xff), region = 32  ;;  %230 = vmatprep.mubr.bf16.mxu0 (!%p138_p2), %v558_v1  ;;  %288 = vmatprep.mubr.bf16.mxu1 (!%p138_p2), %v558_v1  ;;  %v190_v3 = vsel (!%p138_p2), %vm188_vm0, 4294967295, %v559_v2  ;;  %v172_v17 = vld [vmem:[%s610_s1] sm:$0xf] (!%p138_p2)  ;;  %vm184_vm2 = vcmask (!%p138_p2), 72704   ;;  %vm436_vm3 = vcmask (!%p138_p2), 556036  }
   0x7   : > { %537 = vset.pattern.permute.xlu0 (!%p138_p2), %v558_v1  ;;  %v191_v4 = vsel (!%p138_p2), %vm189_vm1, %v190_v3, 0  ;;  %vm437_vm4 = vmor (!%p138_p2), %vm436_vm3, %vm188_vm0 }
   0x8   : > { %421 = vperm.xlu0 (!%p138_p2), %537, %v173_v0  }
   0xd   : > { %s614_s13 = smov (!%p161_p3, %s494_s13), 1 }
   0xe   : > { %s524_s16 = sshll.u32 %s614_s13, 6  ;;  %s525_s22 = sshll.u32 %s614_s13, 3 }
   0xf   : > { %s165_s19 = scalar_lea.vmem %s609_s0, %s524_s16  ;;  %s170_s25 = scalar_lea.vmem %s612_s3, %s525_s22 }
  0x10   : > { %v538_v5 = vld [vmem:[%s165_s19 + $0x4] ss:$8 sps:$4 sm:$0x1f]   ;;  %v540_v6 = vld [vmem:[%s165_s19 + $0x14] ss:$8 sps:$4 sm:$0x1f]  }
  0x11   : > { %v196_v7 = vand.u32 %v538_v5, %v191_v4  ;;  %v542_v8 = vld [vmem:[%s165_s19] ss:$8 sps:$4 sm:$0x1f]   ;;  %v543_v9 = vld [vmem:[%s165_s19 + $0x10] ss:$8 sps:$4 sm:$0x1f]   ;;  %v254_v10 = vand.u32 %v540_v6, %v191_v4 }
  0x12   : > { %v544_v11 = vld [vmem:[%s165_s19 + $0x20] ss:$8 sps:$4 sm:$0x1f]   ;;  %v193_v12 = vand.u32 %v542_v8, %v191_v4  ;;  %v251_v13 = vand.u32 %v543_v9, %v191_v4  ;;  %v546_v14 = vld [vmem:[%s165_s19 + $0x24] ss:$8 sps:$4 sm:$0x1f]  }
  0x13   : > { %198 = vmatprep.subr.bf16.mxu0 %v196_v7  ;;  %256 = vmatprep.subr.bf16.mxu1 %v254_v10  ;;  %v547_v15 = vld [vmem:[%s165_s19 + $0x30] ss:$8 sps:$4 sm:$0x1f]   ;;  %v549_v16 = vld [vmem:[%s165_s19 + $0x34] ss:$8 sps:$4 sm:$0x1f]   ;;  %v314_v18 = vand.u32 %v546_v14, %v191_v4  ;;  %v311_v19 = vand.u32 %v544_v11, %v191_v4 }
  0x14   : > { %199 = vmatpush1.bf16.msra.mxu0 %v193_v12  ;;  %257 = vmatpush1.bf16.msra.mxu1 %v251_v13  ;;  %v374_v20 = vand.u32 %v549_v16, %v191_v4  ;;  %v371_v21 = vand.u32 %v547_v15, %v191_v4 }
  0x15   : > { %316 = vmatprep.subr.bf16.mxu0 %v314_v18 }
  0x16   : > { %376 = vmatprep.subr.bf16.mxu1 %v374_v20 }
  0x17   : > { %505 = vmatmul.mubr.msk.bf16.vlgmr.msra.gmra.mrb[0].mxu0 %vm184_vm2, %v172_v17  ;;  %510 = vmatmul.mubr.msk.bf16.vlgmr.msra.gmra.mrb[0].mxu1 %vm184_vm2, %v172_v17 }
  0x18   : > { %317 = vmatpush1.bf16.msra.mxu0 %v311_v19  ;;  %377 = vmatpush1.bf16.msra.mxu1 %v371_v21 }
  0x19   : > { %348 = vmatprep.mubr.bf16.mxu0 %v558_v1  ;;  %408 = vmatprep.mubr.bf16.mxu1 %v558_v1 }
  0x1f   : > { %515 = vmatmul.mubr.msk.bf16.vlgmr.msra.gmra.mrb[4].mxu0 %vm184_vm2, %v172_v17  ;;  %520 = vmatmul.mubr.msk.bf16.vlgmr.msra.gmra.mrb[4].mxu1 %vm184_vm2, %v172_v17 }
  0x87   : > { %v422_v32 = vpop.permute.xlu0 %421 }
  0xea   : > { %v232_v22 = vpop.f32.mrb[0].mxu0  ;;  %v290_v23 = vpop.f32.mrb[0].mxu1 }
  0xeb   : > { %v297_v24 = vmax.f32 %v232_v22, %v290_v23  ;;  %v234_v25 = vpop.f32.mrb[1].mxu0  ;;  %v292_v26 = vpop.f32.mrb[1].mxu1 }
  0xec   : > { %v298_v27 = vmax.f32 %v234_v25, %v292_v26  ;;  %v236_v28 = vpop.f32.mrb[2].mxu0  ;;  %v294_v29 = vpop.f32.mrb[2].mxu1 }
  0xed   : > { %v237_v30 = vpop.f32.mrb[3].mxu0  ;;  %v295_v31 = vpop.f32.mrb[3].mxu1 }
  0xf2   : > { %v350_v33 = vpop.f32.mrb[4].mxu0  ;;  %v410_v34 = vpop.f32.mrb[4].mxu1 }
  0xf3   : > { %v357_v35 = vmax.f32 %v297_v24, %v350_v33  ;;  %v352_v36 = vpop.f32.mrb[5].mxu0  ;;  %v412_v37 = vpop.f32.mrb[5].mxu1 }
  0xf4   : > { %v358_v38 = vmax.f32 %v298_v27, %v352_v36  ;;  %v354_v39 = vpop.f32.mrb[6].mxu0  ;;  %v414_v40 = vpop.f32.mrb[6].mxu1 }
  0xf5   : > { %v417_v41 = vmax.f32 %v357_v35, %v410_v34  ;;  %v355_v42 = vpop.f32.mrb[7].mxu0  ;;  %v415_v43 = vpop.f32.mrb[7].mxu1 }
  0xf6   : > { %v418_v44 = vmax.f32 %v358_v38, %v412_v37 }
  0xf7   : > { %v424_v45 = vadd.f32 %v422_v32, %v417_v41 }
  0xf8   : > { %v425_v46 = vadd.f32 %v422_v32, %v418_v44 }
  0xf9   : > { %v426_v47 = vmax.f32 %v424_v45, 0.0 }
  0xfa   : > { %v427_v48 = vmax.f32 %v425_v46, 0.0 }
  0xfc   : > { %v526_v49 = vpack.c.bf16 %v427_v48, %v426_v47 }
  0xfe   : > { %438 = vst.msk [vmem:[%s170_s25] sm:$0xff] %vm437_vm4, %v526_v49 }
  0xff PF: > { %s13_s12 = sadd.s32 1, %s556_s12  }
 0x100   : > { %p10_p4 = scmp.ge.s32.totalorder %s13_s12, 4  }
 0x102   :  { %12 = sbr.rel (!%p10_p4) target bundleno = 1 (0x1), region = 65 }

// kernel: convnet_vi_forward.3
= control target key start
LH: loop header
LB: loop body
LE: loop exit
PB: predicated region body
PF: predicated region fallthrough
CT: control target
= control target key end

     0   :  { %s861_s18 = smov 0   ;;  %s955_s0 = inlined_call_operand.vmem [shape: bf16[2,1,4,72,49], index: 0, kind: input, shape index: {}]   ;;  %s956_s1 = inlined_call_operand.vmem [shape: bf16[8,72], index: 1, kind: input, shape index: {}]   ;;  %s957_s2 = inlined_call_operand.vmem [shape: f32[8,1], index: 2, kind: input, shape index: {}]   ;;  %s958_s3 = inlined_call_operand.vmem [shape: f32[2,8,49], index: 3, kind: input, shape index: {}]   ;;  %s959_s4 = inlined_call_operand.vmem [shape: f32[2,1], index: 4, kind: input, shape index: {}]   ;;  %s960_s5 = inlined_call_operand.vmem [shape: f32[2,1,2,1], index: 5, kind: output, shape index: {}]  }
   0x1 LB: > { %s647_s19 = sadd.s32 4294967295, %s826_s18   ;;  %p651_p0 = scmp.ge.s32.totalorder %s826_s18, 1  ;;  %s826_s18 = sphi %s861_s18, %s15_s18  }
   0x2   : > { %p187_p1 = scmp.lt.s32.totalorder %s826_s18, 3 }
   0x4   : > { %p188_p2 = pnand %p651_p0, %p187_p1 }
   0x5   : > { %p214_p3 = scmp.lt.s32.totalorder (!%p188_p2), %s647_s19, 1  ;;  %v828_v0 = vmov (!%p188_p2), 0.0   ;;  %v225_v1 = vld [vmem:[%s957_s2] sm:$0xff] (!%p188_p2)  ;;  %vm829_vm0 = vmmov (!%p188_p2), 0   ;;  %v830_v2 = vmov (!%p188_p2), 0   ;;  %vm269_vm1 = vcmask (!%p188_p2), 1043456  }
   0x6   : > { %191 = sbr.rel (%p188_p2) target bundleno = 571 (0x23b), region = 40  ;;  %731 = vmatprep.subr.bf16.mxu0 (!%p188_p2), %v828_v0  ;;  %745 = vmatprep.subr.bf16.mxu1 (!%p188_p2), %v828_v0  ;;  %v224_v15 = vld [vmem:[%s956_s1] sm:$0xf] (!%p188_p2)  ;;  %vm265_vm2 = vcmask (!%p188_p2), 588800   ;;  %v227_v49 = vld [vmem:[%s958_s3 + $0x8] sm:$0xff] (!%p188_p2)  ;;  %vm565_vm3 = vcmask (!%p188_p2), 400384   ;;  %v574_v56 = vlaneseq (!%p188_p2) }
   0x7   : > { %741 = vmatprep.mubr.msk.bf16.mxu0 (!%p188_p2), %vm829_vm0, %v828_v0  ;;  %755 = vmatprep.mubr.msk.bf16.mxu1 (!%p188_p2), %vm829_vm0, %v828_v0  ;;  %v226_v50 = vld [vmem:[%s958_s3] sm:$0xff] (!%p188_p2)  ;;  %vm584_vm4 = vcmask (!%p188_p2), 1041409   ;;  %vm587_vm5 = vcmask (!%p188_p2), 58368   ;;  %vm592_vm6 = vcmask (!%p188_p2), 1024  }
   0x8   : > { %799 = vset.pattern.permute.xlu0 (!%p188_p2), %v830_v2  ;;  %v575_v57 = vand.u32 (!%p188_p2), 127, %v574_v56  ;;  %v577_v58 = vshrl.u32 (!%p188_p2), %v574_v56, 7  ;;  %v228_v2 = vld [vmem:[%s959_s4] sm:$0x3] (!%p188_p2) }
   0x9   : > { %558 = vperm.xlu0 (!%p188_p2), %799, %v225_v1  }
   0xa   : > { %v578_v59 = vsub.s32 (!%p188_p2), %v575_v57, %v577_v58 }
   0xd   : > { %s962_s19 = smov (!%p214_p3, %s647_s19), 1 }
   0xe   : > { %s787_s22 = smul.u32 144, %s962_s19  ;;  %s653_s7 = sshll.u32 %s962_s19, 1 }
   0xf   : > { %s222_s12 = scalar_lea.vmem %s960_s5, %s653_s7 }
  0x10   : > { %s884_s25 = scalar_lea.vmem %s955_s0, %s787_s22 }
  0x11   : > { %v800_v3 = vld [vmem:[%s884_s25] sm:$0xff]   ;;  %v802_v5 = vld [vmem:[%s884_s25 + $0x8] sm:$0xff]   ;;  %v804_v7 = vld [vmem:[%s884_s25 + $0x10] sm:$0xff]  }
  0x12   : > { %v801_v4 = vld [vmem:[%s884_s25 + $0x24] sm:$0xff]   ;;  %732 = vmatpush3.bf16.msra.mxu0 %v800_v3  ;;  %v803_v6 = vld [vmem:[%s884_s25 + $0x2c] sm:$0xff]   ;;  %v805_v8 = vld [vmem:[%s884_s25 + $0x34] sm:$0xff]  }
  0x13   : > { %746 = vmatpush3.bf16.msra.mxu1 %v801_v4  ;;  %733 = vmatprep.subr.bf16.mxu0 %v828_v0  ;;  %v806_v9 = vld [vmem:[%s884_s25 + $0x18] sm:$0xff]   ;;  %v808_v11 = vld [vmem:[%s884_s25 + $0x20] ss:$0 sps:$4 sm:$0xff]   ;;  %v809_v12 = vld [vmem:[%s884_s25 + $0x44] ss:$0 sps:$4 sm:$0xff]  }
  0x14   : > { %747 = vmatprep.subr.bf16.mxu1 %v828_v0  ;;  %v807_v10 = vld [vmem:[%s884_s25 + $0x3c] sm:$0xff]   ;;  %v271_v13 = vsel %vm269_vm1, %v808_v11, 0  ;;  %v351_v14 = vsel %vm269_vm1, %v809_v12, 0  ;;  %v810_v16 = vld [vmem:[%s884_s25 + $0x48] sm:$0xff]   ;;  %v812_v18 = vld [vmem:[%s884_s25 + $0x50] sm:$0xff]  }
  0x15   : > { %v811_v17 = vld [vmem:[%s884_s25 + $0x6c] sm:$0xff]   ;;  %v813_v19 = vld [vmem:[%s884_s25 + $0x74] sm:$0xff]   ;;  %v815_v21 = vld [vmem:[%s884_s25 + $0x7c] sm:$0xff]  }
  0x16   : > { %734 = vmatpush3.bf16.msra.mxu0 %v802_v5  ;;  %v814_v20 = vld [vmem:[%s884_s25 + $0x58] sm:$0xff]   ;;  %v816_v22 = vld [vmem:[%s884_s25 + $0x60] sm:$0xff]   ;;  %v818_v24 = vld [vmem:[%s884_s25 + $0x68] ss:$0 sps:$4 sm:$0xff]  }
  0x17   : > { %748 = vmatpush3.bf16.msra.mxu1 %v803_v6  ;;  %735 = vmatprep.subr.bf16.mxu0 %v828_v0  ;;  %v817_v23 = vld [vmem:[%s884_s25 + $0x84] sm:$0xff]   ;;  %v819_v25 = vld [vmem:[%s884_s25 + $0x8c] ss:$0 sps:$4 sm:$0xff]   ;;  %v432_v26 = vsel %vm269_vm1, %v818_v24, 0 }
  0x18   : > { %749 = vmatprep.subr.bf16.mxu1 %v828_v0  ;;  %v513_v27 = vsel %vm269_vm1, %v819_v25, 0 }
  0x1a   : > { %736 = vmatpush3.bf16.msra.mxu0 %v804_v7 }
  0x1b   : > { %750 = vmatpush3.bf16.msra.mxu1 %v805_v8  ;;  %737 = vmatprep.subr.bf16.mxu0 %v828_v0 }
  0x1c   : > { %751 = vmatprep.subr.bf16.mxu1 %v828_v0 }
  0x1e   : > { %738 = vmatpush3.bf16.msra.mxu0 %v806_v9 }
  0x1f   : > { %752 = vmatpush3.bf16.msra.mxu1 %v807_v10  ;;  %739 = vmatprep.subr.bf16.mxu0 %v828_v0 }
  0x20   : > { %753 = vmatprep.subr.bf16.mxu1 %v828_v0 }
  0x22   : > { %740 = vmatpush3.bf16.msra.mxu0 %v271_v13 }
  0x23   : > { %754 = vmatpush3.bf16.msra.mxu1 %v351_v14  ;;  %759 = vmatprep.subr.bf16.mxu0 %v828_v0 }
  0x24   : > { %773 = vmatprep.subr.bf16.mxu1 %v828_v0 }
  0x25   : > { %742 = vmatmul.mubr.msk.bf16.vlgmr.msra.gmra.mrb[0].mxu0 %vm265_vm2, %v224_v15 }
  0x26   : > { %756 = vmatmul.mubr.msk.bf16.vlgmr.msra.gmra.mrb[0].mxu1 %vm265_vm2, %v224_v15  ;;  %760 = vmatpush3.bf16.msra.mxu0 %v810_v16 }
  0x27   : > { %774 = vmatpush3.bf16.msra.mxu1 %v811_v17  ;;  %761 = vmatprep.subr.bf16.mxu0 %v828_v0 }
  0x28   : > { %775 = vmatprep.subr.bf16.mxu1 %v828_v0  ;;  %769 = vmatprep.mubr.msk.bf16.mxu0 %vm829_vm0, %v828_v0 }
  0x29   : > { %783 = vmatprep.mubr.msk.bf16.mxu1 %vm829_vm0, %v828_v0 }
  0x2a   : > { %762 = vmatpush3.bf16.msra.mxu0 %v812_v18 }
  0x2b   : > { %776 = vmatpush3.bf16.msra.mxu1 %v813_v19  ;;  %763 = vmatprep.subr.bf16.mxu0 %v828_v0 }
  0x2c   : > { %777 = vmatprep.subr.bf16.mxu1 %v828_v0 }
  0x2e   : > { %764 = vmatpush3.bf16.msra.mxu0 %v814_v20 }
  0x2f   : > { %778 = vmatpush3.bf16.msra.mxu1 %v815_v21  ;;  %765 = vmatprep.subr.bf16.mxu0 %v828_v0 }
  0x30   : > { %779 = vmatprep.subr.bf16.mxu1 %v828_v0 }
  0x32   : > { %766 = vmatpush3.bf16.msra.mxu0 %v816_v22 }
  0x33   : > { %780 = vmatpush3.bf16.msra.mxu1 %v817_v23  ;;  %767 = vmatprep.subr.bf16.mxu0 %v828_v0 }
  0x34   : > { %781 = vmatprep.subr.bf16.mxu1 %v828_v0 }
  0x36   : > { %768 = vmatpush3.bf16.msra.mxu0 %v432_v26 }
  0x37   : > { %782 = vmatpush3.bf16.msra.mxu1 %v513_v27 }
  0x39   : > { %770 = vmatmul.mubr.msk.bf16.vlgmr.msra.gmra.mrb[4].mxu0 %vm265_vm2, %v224_v15 }
  0x3a   : > { %784 = vmatmul.mubr.msk.bf16.vlgmr.msra.gmra.mrb[4].mxu1 %vm265_vm2, %v224_v15 }
  0x88   : > { %v559_v38 = vpop.permute.xlu0 %558 }
  0xf8   : > { %v307_v28 = vpop.f32.mrb[0].mxu0 }
  0xf9   : > { %v387_v29 = vpop.f32.mrb[0].mxu1  ;;  %v743_v30 = vpop.f32.mrb[1].mxu0 }
  0xfa   : > { %v393_v31 = vmax.f32 %v307_v28, %v387_v29  ;;  %v757_v32 = vpop.f32.mrb[1].mxu1  ;;  %v310_v33 = vpop.f32.mrb[2].mxu0 }
  0xfb   : > { %v390_v34 = vpop.f32.mrb[2].mxu1  ;;  %v744_v35 = vpop.f32.mrb[3].mxu0 }
  0xfc   : > { %v758_v36 = vpop.f32.mrb[3].mxu1 }
 0x10c   : > { %v468_v37 = vpop.f32.mrb[4].mxu0 }
 0x10d   : > { %v474_v39 = vmax.f32 %v393_v31, %v468_v37  ;;  %v549_v40 = vpop.f32.mrb[4].mxu1  ;;  %v771_v41 = vpop.f32.mrb[5].mxu0 }
 0x10e   : > { %v785_v42 = vpop.f32.mrb[5].mxu1  ;;  %v471_v43 = vpop.f32.mrb[6].mxu0 }
 0x10f   : > { %v555_v44 = vmax.f32 %v474_v39, %v549_v40  ;;  %v552_v45 = vpop.f32.mrb[6].mxu1  ;;  %v772_v46 = vpop.f32.mrb[7].mxu0 }
 0x110   : > { %v786_v47 = vpop.f32.mrb[7].mxu1 }
 0x111   : > { %v561_v48 = vadd.f32 %v559_v38, %v555_v44 }
 0x113   : > { %v562_v51 = vmax.f32 %v561_v48, 0.0 }
 0x115   : > { %v564_v52 = vmul.f32 %v562_v51, %v227_v49  ;;  %v563_v53 = vmul.f32 %v562_v51, %v226_v50 }
 0x117   : > { %v569_v54 = vsel %vm565_vm3, %v564_v52, 0.0  ;;  %v566_v55 = vsel %vm565_vm3, %v563_v53, 0.0 }
 0x118   : > { %570 = vadd.xlane.f32.xlu1 %v569_v54  ;;  %567 = vadd.xlane.f32.xlu0 %v566_v55 }
 0x1a5   : > { %v571_v60 = vpop.xlane.xlu1 %570  ;;  %v568_v61 = vpop.xlane.xlu0 %567 }
 0x1a6   : > { %v583_v62 = vrot.slane %v571_v60, %v578_v59  ;;  %v579_v63 = vrot.slane %v568_v61, %v578_v59 }
 0x1a8   : > { %v585_v0 = vsel %vm584_vm4, %v583_v62, %v579_v63 }
 0x1a9   : > { %v588_v1 = vsel %vm587_vm5, %v585_v0, 0.0 }
 0x1aa   : > { %589 = vadd.xlane.f32.xlu1 %v588_v1 }
 0x237   : > { %v590_v3 = vpop.xlane.xlu1 %589 }
 0x238   : > { %v591_v4 = vadd.f32 %v590_v3, %v228_v2 }
 0x23a   : > { %593 = vst.msk [vmem:[%s222_s12] sm:$0x3] %vm592_vm6, %v591_v4 }
 0x23b PF: > { %s15_s18 = sadd.s32 1, %s826_s18  }
 0x23c   : > { %p12_p4 = scmp.ge.s32.totalorder %s15_s18, 4  }
 0x23e   :  { %14 = sbr.rel (!%p12_p4) target bundleno = 1 (0x1), region = 73 }

</bundles_post_ra>
